<compile_context>
chip_gen: v7x
topology: tpu7x:2x2x1
jax: 0.10.0
libtpu: 0.0.40
codegen_flags: <defaults>
</compile_context>

<pallas_src>
import jax
import jax.numpy as jnp
from jax.experimental import pallas as pl
from jax.experimental.pallas import tpu as pltpu


def _round_up(a, m):
    return (a + m - 1) // m * m


def _cdiv(a, m):
    return (a + m - 1) // m


def _make_dwc_kernel(c, bt, use_mxu):
    """out[i] = sigmoid(W @ x[i] + bias) for each of the bt images in the block."""

    def kernel(x_ref, w_ref, b_ref, o_ref):
        # x_ref : (bt, C, T)  channels on sublanes, spatial tile on lanes
        # w_ref : (C, C)      nn.Linear weight [out, in]
        # b_ref : (C, 1)      bias (f32), broadcast over lanes
        # o_ref : (bt, C, T)
        w = w_ref[...]
        bias = b_ref[...]
        for i in range(bt):  # static unroll over the batch block
            x = x_ref[i]
            if use_mxu:
                y = jnp.dot(w, x, preferred_element_type=jnp.float32)
            else:
                # Tiny contraction (C <= 8): unrolled broadcast-FMAs on the VPU;
                # a C-wide matmul would leave the MXU nearly idle.
                xf = x.astype(jnp.float32)
                wf = w.astype(jnp.float32)
                y = wf[:, 0:1] * xf[0:1, :]
                for k in range(1, c):
                    y = y + wf[:, k:k + 1] * xf[k:k + 1, :]
            y = y + bias
            # sigmoid(y) == 0.5*tanh(0.5*y) + 0.5: single EUP op (tanh); the
            # mul/add ride the VPU which has slack in this memory-bound kernel.
            o_ref[i] = (0.5 * jnp.tanh(0.5 * y) + 0.5).astype(o_ref.dtype)

    return kernel


def _choose_tiling(B, C, HW, in_dsize, out_dsize, target_block_bytes):
    """Pick (lane tile, #hw tiles, batch block) so each grid step moves ~target bytes."""
    hw_cap = _round_up(HW, 128)
    per_lane_bytes = max(C * (in_dsize + out_dsize), 1)
    lanes = max(128, target_block_bytes // per_lane_bytes)
    tile = min(_round_up(lanes, 128), hw_cap)
    n_hw = _cdiv(HW, tile)

    bt = 1
    if n_hw == 1:
        # Whole image fits in one lane tile but the block is still small: fold
        # several batch images per grid step to amortize per-step overhead.
        blk_bytes = max(C * tile * (in_dsize + out_dsize), 1)
        bt = max(1, min(B, target_block_bytes // blk_bytes))
        if bt >= B and B >= 2:
            bt = B // 2  # keep >= 2 grid steps so both v7x TensorCores get work
        while B % bt:    # avoid ragged batch blocks
            bt -= 1
    return tile, n_hw, bt


def dwc_forward(x_nchw, weight, bias, *, target_block_bytes=1 << 20):
    """DWC forward. x_nchw: (B, C, H, W); weight: (C, C) [out, in]; bias: (C,)."""
    B, C, H, W = x_nchw.shape
    HW = H * W
    in_dsize = x_nchw.dtype.itemsize
    out_dsize = in_dsize

    # Free reshape: NCHW -> (B, C, H*W). No HBM-round-trip transposes in this layout.
    x3 = x_nchw.reshape(B, C, HW)
    weight = weight.astype(x_nchw.dtype)            # explicit dtype into the dot
    b2 = bias.astype(jnp.float32).reshape(C, 1)

    tile, n_hw, bt = _choose_tiling(B, C, HW, in_dsize, out_dsize, target_block_bytes)

    # Resident weight: constant index_map — don't waste VMEM double-buffering it
    # once it is big enough to matter (large C). Tiny W keeps the default.
    w_dsize = weight.dtype.itemsize
    w_spec_kwargs = {}
    w_bufs = 2
    if C * C * w_dsize >= (1 << 20):
        w_spec_kwargs["pipeline_mode"] = pl.Buffered(1)
        w_bufs = 1
    w_spec = pl.BlockSpec((C, C), lambda b, t: (0, 0), **w_spec_kwargs)

    # VMEM budget: double-buffered x/out blocks + weight buffer(s) + slack.
    need = (2 * bt * C * tile * (in_dsize + out_dsize)
            + w_bufs * C * C * w_dsize + 2 * C * 4 + (1 << 20))
    vmem_limit = int(min(60 << 20, max(need, 16 << 20)))  # stay under v7x's 64 MiB physical

    use_mxu = C > 8
    kernel = _make_dwc_kernel(C, bt, use_mxu)

    out3 = pl.pallas_call(
        kernel,
        out_shape=jax.ShapeDtypeStruct((B, C, HW), x_nchw.dtype),
        grid_spec=pltpu.PrefetchScalarGridSpec(
            num_scalar_prefetch=0,
            # Ragged last lane-block is safe: each output lane depends only on the
            # same input lane (contraction is over C on sublanes), and tail stores
            # are masked. No pre-pad / post-slice HBM round trips.
            grid=(B // bt, n_hw),
            in_specs=[
                pl.BlockSpec((bt, C, tile), lambda b, t: (b, 0, t)),  # x slab tile
                w_spec,                                               # W (resident)
                pl.BlockSpec((C, 1), lambda b, t: (0, 0)),            # bias (resident)
            ],
            out_specs=pl.BlockSpec((bt, C, tile), lambda b, t: (b, 0, t)),
        ),
        compiler_params=pltpu.CompilerParams(
            dimension_semantics=("parallel", "parallel"),
            vmem_limit_bytes=vmem_limit),
    )(x3, weight, b2)

    return out3.reshape(B, C, H, W)


def _reference(x_nchw, weight, bias):
    B, C, H, W = x_nchw.shape
    xt = jnp.transpose(x_nchw, (0, 2, 3, 1)).reshape(B, -1, C)
    rs1 = xt @ weight.T + bias
    rs2 = jax.nn.sigmoid(rs1)
    return jnp.transpose(rs2, (0, 2, 1)).reshape(B, C, H, W)


if __name__ == "__main__":
    key = jax.random.PRNGKey(0)
    B, C, H, W = 2, 4, 16, 16

    kx, kw, kb = jax.random.split(key, 3)
    x = jax.random.normal(kx, (B, C, H, W), dtype=jnp.float32)

    # Deterministic nn.Linear-style init: U(-1/sqrt(C), 1/sqrt(C))
    bound = 1.0 / (C ** 0.5)
    weight = jax.random.uniform(kw, (C, C), minval=-bound, maxval=bound,
                                dtype=jnp.float32)
    bias = jax.random.uniform(kb, (C,), minval=-bound, maxval=bound,
                              dtype=jnp.float32)

    out = dwc_forward(x, weight, bias)
    out = jax.block_until_ready(out)

    ref = _reference(x, weight, bias)
    assert out.shape == (B, C, H, W)
    assert jnp.allclose(out, ref, atol=2e-5, rtol=2e-5), "mismatch vs reference"

    print("KERNEL_OK")
</pallas_src>

<mosaic_0001>
module attributes {stable_mosaic.version = 11 : i64} {
  func.func @kernel(%arg0: i32, %arg1: i32, %arg2: memref<1x4x256xf32, #tpu.memory_space<vmem>>, %arg3: memref<4x4xf32, #tpu.memory_space<vmem>>, %arg4: memref<4x1xf32, #tpu.memory_space<vmem>>, %arg5: memref<1x4x256xf32, #tpu.memory_space<vmem>>) attributes {dimension_semantics = [#tpu.dimension_semantics<parallel>, #tpu.dimension_semantics<parallel>], iteration_bounds = array<i64: 2, 1>, scalar_prefetch = 0 : i64, scratch_operands = 0 : i64, tpu.core_type = #tpu.core_type<tc>, window_params = [{transform_indices = @transform_0, window_bounds = array<i64: 1, 4, 256>}, {pipeline_mode = #tpu.pipeline_mode<synchronous>, transform_indices = @transform_1, window_bounds = array<i64: 4, 4>}, {pipeline_mode = #tpu.pipeline_mode<synchronous>, transform_indices = @transform_2, window_bounds = array<i64: 4, 1>}, {transform_indices = @transform_3, window_bounds = array<i64: 1, 4, 256>}]} {
    %c0 = arith.constant 0 : index
    %c0_0 = arith.constant 0 : index
    %0 = vector.load %arg3[%c0, %c0_0] : memref<4x4xf32, #tpu.memory_space<vmem>>, vector<4x4xf32>
    %c0_1 = arith.constant 0 : index
    %c0_2 = arith.constant 0 : index
    %1 = vector.load %arg4[%c0_1, %c0_2] : memref<4x1xf32, #tpu.memory_space<vmem>>, vector<4x1xf32>
    %c0_3 = arith.constant 0 : index
    %c0_4 = arith.constant 0 : index
    %c0_5 = arith.constant 0 : index
    %2 = vector.load %arg2[%c0_3, %c0_4, %c0_5] : memref<1x4x256xf32, #tpu.memory_space<vmem>>, vector<1x4x256xf32>
    %3 = vector.shape_cast %2 : vector<1x4x256xf32> to vector<4x256xf32>
    %4 = vector.extract_strided_slice %0 {offsets = [0, 0], sizes = [4, 1], strides = [1, 1]} : vector<4x4xf32> to vector<4x1xf32>
    %5 = vector.extract_strided_slice %3 {offsets = [0, 0], sizes = [1, 256], strides = [1, 1]} : vector<4x256xf32> to vector<1x256xf32>
    %6 = vector.broadcast %4 : vector<4x1xf32> to vector<4x256xf32>
    %7 = vector.broadcast %5 : vector<1x256xf32> to vector<4x256xf32>
    %8 = arith.mulf %6, %7 : vector<4x256xf32>
    %9 = vector.extract_strided_slice %0 {offsets = [0, 1], sizes = [4, 1], strides = [1, 1]} : vector<4x4xf32> to vector<4x1xf32>
    %10 = vector.extract_strided_slice %3 {offsets = [1, 0], sizes = [1, 256], strides = [1, 1]} : vector<4x256xf32> to vector<1x256xf32>
    %11 = vector.broadcast %9 : vector<4x1xf32> to vector<4x256xf32>
    %12 = vector.broadcast %10 : vector<1x256xf32> to vector<4x256xf32>
    %13 = arith.mulf %11, %12 : vector<4x256xf32>
    %14 = arith.addf %8, %13 : vector<4x256xf32>
    %15 = vector.extract_strided_slice %0 {offsets = [0, 2], sizes = [4, 1], strides = [1, 1]} : vector<4x4xf32> to vector<4x1xf32>
    %16 = vector.extract_strided_slice %3 {offsets = [2, 0], sizes = [1, 256], strides = [1, 1]} : vector<4x256xf32> to vector<1x256xf32>
    %17 = vector.broadcast %15 : vector<4x1xf32> to vector<4x256xf32>
    %18 = vector.broadcast %16 : vector<1x256xf32> to vector<4x256xf32>
    %19 = arith.mulf %17, %18 : vector<4x256xf32>
    %20 = arith.addf %14, %19 : vector<4x256xf32>
    %21 = vector.extract_strided_slice %0 {offsets = [0, 3], sizes = [4, 1], strides = [1, 1]} : vector<4x4xf32> to vector<4x1xf32>
    %22 = vector.extract_strided_slice %3 {offsets = [3, 0], sizes = [1, 256], strides = [1, 1]} : vector<4x256xf32> to vector<1x256xf32>
    %23 = vector.broadcast %21 : vector<4x1xf32> to vector<4x256xf32>
    %24 = vector.broadcast %22 : vector<1x256xf32> to vector<4x256xf32>
    %25 = arith.mulf %23, %24 : vector<4x256xf32>
    %26 = arith.addf %20, %25 : vector<4x256xf32>
    %27 = vector.broadcast %1 : vector<4x1xf32> to vector<4x256xf32>
    %28 = arith.addf %26, %27 : vector<4x256xf32>
    %cst = arith.constant 5.000000e-01 : f32
    %29 = vector.broadcast %cst : f32 to vector<4x256xf32>
    %30 = arith.mulf %29, %28 : vector<4x256xf32>
    %31 = math.tanh %30 : vector<4x256xf32>
    %cst_6 = arith.constant 5.000000e-01 : f32
    %32 = vector.broadcast %cst_6 : f32 to vector<4x256xf32>
    %33 = arith.mulf %32, %31 : vector<4x256xf32>
    %cst_7 = arith.constant 5.000000e-01 : f32
    %34 = vector.broadcast %cst_7 : f32 to vector<4x256xf32>
    %35 = arith.addf %33, %34 : vector<4x256xf32>
    %c0_8 = arith.constant 0 : index
    %c0_9 = arith.constant 0 : index
    %c0_10 = arith.constant 0 : index
    %36 = vector.load %arg5[%c0_8, %c0_9, %c0_10] : memref<1x4x256xf32, #tpu.memory_space<vmem>>, vector<1x4x256xf32>
    %37 = vector.shape_cast %36 : vector<1x4x256xf32> to vector<4x256xf32>
    %38 = vector.shape_cast %35 : vector<4x256xf32> to vector<1x4x256xf32>
    tpu.vector_store %arg5[%c0_8, %c0_9, %c0_10], %38 {strides = array<i32>} : memref<1x4x256xf32, #tpu.memory_space<vmem>>, vector<1x4x256xf32>,
    return
  }
  func.func @transform_0(%arg0: i32, %arg1: i32) -> (i32, i32, i32) {
    %c0_i32 = arith.constant 0 : i32
    %c0_i32_0 = arith.constant 0 : i32
    return %arg0, %c0_i32, %arg1 : i32, i32, i32
  }
  func.func @transform_1(%arg0: i32, %arg1: i32) -> (i32, i32) {
    %c0_i32 = arith.constant 0 : i32
    %c0_i32_0 = arith.constant 0 : i32
    %c0_i32_1 = arith.constant 0 : i32
    return %c0_i32, %c0_i32_0 : i32, i32
  }
  func.func @transform_2(%arg0: i32, %arg1: i32) -> (i32, i32) {
    %c0_i32 = arith.constant 0 : i32
    %c0_i32_0 = arith.constant 0 : i32
    %c0_i32_1 = arith.constant 0 : i32
    return %c0_i32, %c0_i32_0 : i32, i32
  }
  func.func @transform_3(%arg0: i32, %arg1: i32) -> (i32, i32, i32) {
    %c0_i32 = arith.constant 0 : i32
    %c0_i32_0 = arith.constant 0 : i32
    return %arg0, %c0_i32, %arg1 : i32, i32, i32
  }
}

</mosaic_0001>

<bundles_post_ra>
// kernel: tpu_custom_call.1
= control target key start
LH: loop header
LB: loop body
LE: loop exit
PB: predicated region body
PF: predicated region fallthrough
CT: control target
= control target key end

     0   :  { %8 = vsyncpa [#allocation3], 0  ;;  %s850_s0 = inlined_call_operand.hbm [shape: f32[2,4,256], index: 0, kind: input, shape index: {}]   ;;  %s851_s1 = inlined_call_operand.vmem [shape: f32[4,4], index: 1, kind: input, shape index: {}]   ;;  %s852_s2 = inlined_call_operand.vmem [shape: f32[4,1], index: 2, kind: input, shape index: {}]   ;;  %s853_s3 = inlined_call_operand.hbm [shape: f32[2,4,256], index: 3, kind: output, shape index: {}]  }
   0x1   :  { %10 = vsyncpa [#allocation3 + $0x1], 0 }
   0x2   :  { %11 = vsyncpa [#allocation4], 0 }
   0x3   :  { %13 = vsyncpa [#allocation4 + $0x1], 0  ;;  %s668_s12 = smov 0   ;;  %s670_s13 = smov 0  }
   0x4   :  { %s672_s14 = smov 0   ;;  %s674_s15 = smov 0  }
   0x5   :  { %s676_s16 = smov 0   ;;  %s678_s17 = smov 0  }
   0x6 LB: > { %s435_s18 = sadd.s32 4294967295, %s640_s17   ;;  %s436_s19 = sadd.s32 4294967294, %s640_s17   ;;  %s640_s17 = sphi %s678_s17, %s19_s17   ;;  %s636_s16 = sphi %s676_s16, %s869_s16   ;;  %s632_s15 = sphi %s674_s15, %s868_s15   ;;  %s628_s14 = sphi %s672_s14, %s867_s14   ;;  %s624_s13 = sphi %s670_s13, %s866_s13   ;;  %s620_s12 = sphi %s668_s12, %s865_s12  }
   0x7   : > { %s31_s20 = sadd.s32 1, %s636_s16  ;;  %s40_s21 = sadd.s32 1, %s628_s14 }
   0x8   : > { %p33_p0 = scmp.ge.s32.totalorder %s31_s20, 2  ;;  %p47_p1 = scmp.ne.s32.totalorder %s628_s14, %s624_s13 }
   0x9   : > { %p48_p2 = scmp.eq.s32.totalorder %s640_s17, 0  ;;  %p53_p3 = scmp.ne.s32.totalorder %s624_s13, %s620_s12 }
   0xa   : > { %s871_s20 = smov (%p33_p0, %s31_s20), 0  ;;  %p54_p5 = scmp.eq.s32.totalorder %s435_s18, 0 }
   0xb   : > { %p709_p4 = por %p48_p2, %p47_p1  ;;  %s35_s23 = ssub.s32 %s636_s16, %s871_s20 }
   0xc   : > { %p121_p6 = scmp.eq.s32.totalorder %s435_s18, 1  ;;  %p38_p7 = scmp.eq.s32.totalorder %s35_s23, 0 }
   0xd   : > { %p715_p8 = por %p54_p5, %p53_p3  ;;  %p127_p10 = scmp.eq.s32.totalorder %s436_s19, 1 }
   0xe   : > { %p719_p9 = por %p121_p6, %p47_p1  ;;  %p464_p13 = scmp.lt.s32.totalorder %s640_s17, 2 }
   0xf   : > { %s724_s26 = scalar_select %p38_p7, %s628_s14, %s40_s21  }
  0x10   : > { %s857_s25 = scalar_select %p719_p9, 1, 0 }
  0x11   : > { %p726_p11 = por %p127_p10, %p53_p3  ;;  %s153_s28 = sand.u32 1, %s628_s14  }
  0x12   : > { %s439_s29 = sshll.u32 %s153_s28, 3  ;;  %s450_s30 = sshll.u32 %s636_s16, 7 }
  0x13   : > { %s858_s27 = scalar_select %p726_p11, 1, 0 }
  0x14   : > { %s737_s6 = scalar_lea.hbm %s850_s0, %s450_s30  ;;  %s157_s7 = scalar_lea.vmem [#allocation2], %s439_s29 }
  0x15   : > { %s167_s8 = sshll.u32 %s157_s7, 4  ;;  %p743_p0 = pnand %p464_p13, %p709_p4  ;;  %s739_s8 = int_to_ptr.vmem [resolvable:$true] %s167_s8 }
  0x16   : > { %s154_s10 = scalar_lea.sflag [#allocation3], %s153_s28  ;;  %s528_s11 = scalar_lea.hbm %s737_s6, 128 }
  0x17   : > { %p529_p3 = scmp.ne.s32.totalorder %s737_s6, %s528_s11  ;;  %p530_p5 = pneg %p743_p0 }
  0x18   : > { %s533_s21 = scalar_lea.hbm %s850_s0, 256  ;;  %p534_p4 = scmp.lt.u32.totalorder %s737_s6, %s850_s0 }
  0x19   : > { %p531_p6 = pnand %p530_p5, %p529_p3  ;;  %p535_p10 = scmp.lt.u32.totalorder %s533_s21, %s528_s11 }
  0x1a   : > { %p537_p12 = scmp.lt.u32.totalorder %s528_s11, %s737_s6 }
  0x1b   : > { %p532_p7 = pneg %p531_p6  ;;  %p536_p13 = por %p535_p10, %p534_p4 }
  0x1d   : > { %p538_p1 = por %p537_p12, %p536_p13 }
  0x1f   : > { %p539_p2 = pnand %p538_p1, %p532_p7 }
  0x21   : > { %542 = shalt.err (!%p539_p2)
}
  0x22   : > { %s543_s28 = scalar_lea.vmem %s739_s8, 128  ;;  %s642_s29 = smov [#allocation2]  }
  0x23   : > { %p544_p3 = scmp.ne.s32.totalorder %s739_s8, %s543_s28  ;;  %s548_s30 = sshll.u32 %s642_s29, 4  ;;  %s549_s30 = int_to_ptr.vmem [resolvable:$false] %s548_s30 }
  0x24   : > { %s550_s4 = scalar_lea.vmem %s549_s30, 256  ;;  %p551_p9 = scmp.lt.s32.totalorder %s739_s8, %s549_s30 }
  0x25   : > { %p546_p6 = pnand %p544_p3, %p530_p5  ;;  %p552_p4 = scmp.lt.s32.totalorder %s550_s4, %s543_s28 }
  0x27   : > { %p547_p11 = pneg %p546_p6  ;;  %p553_p10 = por %p552_p4, %p551_p9 }
  0x29   : > { %p554_p12 = pnand %p553_p10, %p547_p11 }
  0x2b   : > { %557 = shalt.err (!%p554_p12)
}
  0x2c   : > { %459 = dma.hbm_to_vmem [thread:$0]  (!%p743_p0), %s737_s6, 128, %s739_s8, %s154_s10  }
  0x2d   : > { %p860_p1 = scmp.lt.s32.totalorder %s640_s17, 3  ;;  %p861_p2 = scmp.ge.s32.totalorder %s640_s17, 1 }
  0x2f   : > { %p173_p5 = pnand %p861_p2, %p860_p1 }
  0x30   : > { %s779_s5 = sand.u32 (!%p173_p5), 1, %s624_s13  }
  0x31   : > { %176 = sbr.rel (%p173_p5) target bundleno = 236 (0xec), region = 32  ;;  %s443_s7 = sshll.u32 (!%p173_p5), %s779_s5, 3 }
  0x32   : > { %s179_s11 = scalar_lea.sflag (!%p173_p5), [#allocation3], %s779_s5  ;;  %s182_s9 = scalar_lea.vmem (!%p173_p5), [#allocation2], %s443_s7 }
  0x38   : > { %611 = dma.done.wait (%p715_p8), %s179_s11, 128  }
  0x39   : > { %613 = vsyncadd (%p715_p8), %s179_s11, 4294967168  ;;  %v643_v0 = vmov 0   ;;  %v644_v1 = vmov 2   ;;  %v207_v2 = vld [vmem:[%s851_s1] sm:$0xf]  ;;  %v645_v3 = vmov 1   ;;  %v216_v6 = vlaneseq }
  0x3a   : > { %518 = vset.pattern.permute.xlu0 %v643_v0  ;;  %520 = vset.pattern.permute.xlu1 %v644_v1  ;;  %v646_v4 = vmov 3   ;;  %v208_v5 = vld [vmem:[%s852_s2] sm:$0xf]  ;;  %s451_s24 = sshll.u32 %s632_s15, 7  ;;  %s204_s19 = scalar_lea.vmem [#allocation5], %s443_s7 }
  0x3b   : > { %212 = vperm.xlu0 %518, %v207_v2   ;;  %263 = vperm.xlu1 %520, %v207_v2   ;;  %v217_v7 = vshrl.u32 %v216_v6, 7  ;;  %v209_v12 = vld [vmem:[%s182_s9] sm:$0xff]  ;;  %s351_s21 = sshll.u32 %s204_s19, 4  ;;  %s801_s28 = scalar_lea.hbm %s853_s3, %s451_s24  ;;  %s803_s21 = int_to_ptr.vmem [resolvable:$true] %s351_s21 }
  0x3c   : > { %s335_s29 = scalar_lea.sflag [#allocation4], %s779_s5  ;;  %s558_s30 = scalar_lea.vmem %s803_s21, 128 }
  0x3d   : > { %v218_v8 = vsub.s32 0, %v217_v7  ;;  %v222_v9 = vsub.s32 4, %v217_v7  ;;  %v242_v10 = vsub.s32 1, %v217_v7  ;;  %v246_v11 = vsub.s32 5, %v217_v7  ;;  %p559_p8 = scmp.ne.s32.totalorder %s803_s21, %s558_s30  ;;  %p862_p9 = scmp.ne.s32.totalorder %s857_s25, 0 }
  0x3e   : > { %v268_v13 = vsub.s32 2, %v217_v7  ;;  %v272_v14 = vsub.s32 6, %v217_v7  ;;  %v294_v15 = vsub.s32 3, %v217_v7  ;;  %v298_v16 = vsub.s32 7, %v217_v7  ;;  %s647_s15 = smov [#allocation5]  }
  0x3f   : > { %519 = vset.pattern.permute.xlu0 %v645_v3  ;;  %521 = vset.pattern.permute.xlu1 %v646_v4  ;;  %v219_v17 = vrot.slane %v209_v12, %v218_v8  ;;  %v223_v18 = vrot.slane %v209_v12, %v222_v9  ;;  %v243_v19 = vrot.slane %v209_v12, %v242_v10  ;;  %p560_p11 = pnand %p559_p8, %p862_p9  ;;  %s562_s4 = sshll.u32 %s647_s15, 4  ;;  %s563_s4 = int_to_ptr.vmem [resolvable:$false] %s562_s4 }
  0x40   : > { %237 = vperm.xlu0 %519, %v207_v2   ;;  %289 = vperm.xlu1 %521, %v207_v2   ;;  %v247_v20 = vrot.slane %v209_v12, %v246_v11  ;;  %v269_v21 = vrot.slane %v209_v12, %v268_v13  ;;  %v273_v22 = vrot.slane %v209_v12, %v272_v14  ;;  %s564_s7 = scalar_lea.vmem %s563_s4, 256  ;;  %p565_p7 = scmp.lt.s32.totalorder %s803_s21, %s563_s4 }
  0x41   : > { %v295_v25 = vrot.slane %v209_v12, %v294_v15  ;;  %v299_v26 = vrot.slane %v209_v12, %v298_v16  ;;  %v229_v27 = vrot.slane %v219_v17, %v218_v8  ;;  %v233_v28 = vrot.slane %v223_v18, %v218_v8  ;;  %p561_p0 = pneg %p560_p11  ;;  %p566_p13 = scmp.lt.s32.totalorder %s564_s7, %s558_s30 }
  0x42   : > { %v253_v29 = vrot.slane %v243_v19, %v242_v10  ;;  %v257_v30 = vrot.slane %v247_v20, %v242_v10  ;;  %v279_v31 = vrot.slane %v269_v21, %v268_v13  ;;  %v283_v32 = vrot.slane %v273_v22, %v268_v13 }
  0x43   : > { %v305_v33 = vrot.slane %v295_v25, %v294_v15  ;;  %v309_v34 = vrot.slane %v299_v26, %v294_v15  ;;  %p567_p3 = por %p566_p13, %p565_p7 }
  0x44   : > { %522 = vset.pattern.permute.xlu1 %v643_v0  ;;  %523 = vset.pattern.permute.xlu0 %v643_v0 }
  0x45   : > { %316 = vperm.xlu1 %522, %v208_v5   ;;  %p568_p6 = pnand %p567_p3, %p561_p0 }
  0xba   : > { %v213_v23 = vpop.permute.xlu0 %212  ;;  %v264_v24 = vpop.permute.xlu1 %263 }
  0xbb   : > { %v234_v37 = vmul.f32 %v229_v27, %v213_v23  ;;  %v235_v38 = vmul.f32 %v233_v28, %v213_v23  ;;  %v284_v41 = vmul.f32 %v279_v31, %v264_v24  ;;  %v285_v42 = vmul.f32 %v283_v32, %v264_v24 }
  0xbf   : > { %v238_v35 = vpop.permute.xlu0 %237  ;;  %v290_v36 = vpop.permute.xlu1 %289 }
  0xc0   : > { %v258_v39 = vmul.f32 %v253_v29, %v238_v35  ;;  %v259_v40 = vmul.f32 %v257_v30, %v238_v35  ;;  %v310_v45 = vmul.f32 %v305_v33, %v290_v36  ;;  %v311_v46 = vmul.f32 %v309_v34, %v290_v36 }
  0xc2   : > { %v260_v43 = vadd.f32 %v258_v39, %v234_v37  ;;  %v261_v44 = vadd.f32 %v259_v40, %v235_v38 }
  0xc4   : > { %v286_v47 = vadd.f32 %v284_v41, %v260_v43  ;;  %v287_v48 = vadd.f32 %v285_v42, %v261_v44  ;;  %v317_v49 = vpop.permute.xlu1 %316 }
  0xc6   : > { %v312_v50 = vadd.f32 %v310_v45, %v286_v47  ;;  %v313_v51 = vadd.f32 %v311_v46, %v287_v48 }
  0xc8   : > { %v319_v52 = vadd.f32 %v317_v49, %v312_v50  ;;  %v320_v53 = vadd.f32 %v317_v49, %v313_v51 }
  0xca   : > { %v321_v54 = vmul.f32 0.5, %v319_v52  ;;  %v322_v55 = vmul.f32 0.5, %v320_v53 }
  0xcc   : > { %524 = vtanh.f32 %v321_v54 }
  0xcd   : > { %526 = vtanh.f32 %v322_v55 }
  0xd6   : > { %v525_v56 = vpop.eup %524 }
  0xd7   : > { %v527_v57 = vpop.eup %526  ;;  %v325_v58 = vmul.f32 0.5, %v525_v56 }
  0xd8   : > { %v326_v59 = vmul.f32 0.5, %v527_v57 }
  0xd9   : > { %v327_v60 = vadd.f32 0.5, %v325_v58 }
  0xda   : > { %v328_v61 = vadd.f32 0.5, %v326_v59 }
  0xdc   : > { %v331_v62 = vcombine.low %v327_v60, %v328_v61 }
  0xde   : > { %333 = vst [vmem:[%s204_s19] sm:$0xff] %v331_v62 }
  0xdf   : > { %571 = shalt.err (!%p568_p6)
}
  0xe0   : > { %s572_s5 = scalar_lea.hbm %s801_s28, 128  ;;  %s576_s6 = scalar_lea.hbm %s853_s3, 256 }
  0xe1   : > { %p573_p4 = scmp.ne.s32.totalorder %s801_s28, %s572_s5  ;;  %p577_p1 = scmp.lt.u32.totalorder %s801_s28, %s853_s3 }
  0xe2   : > { %p578_p2 = scmp.lt.u32.totalorder %s576_s6, %s572_s5  ;;  %p580_p8 = scmp.lt.u32.totalorder %s572_s5, %s801_s28 }
  0xe3   : > { %p574_p10 = pnand %p573_p4, %p862_p9 }
  0xe4   : > { %p579_p5 = por %p578_p2, %p577_p1 }
  0xe5   : > { %p575_p12 = pneg %p574_p10 }
  0xe6   : > { %p581_p11 = por %p580_p8, %p579_p5 }
  0xe8   : > { %p582_p0 = pnand %p581_p11, %p575_p12 }
  0xea   : > { %585 = shalt.err (!%p582_p0)
}
  0xeb   : > { %454 = dma.vmem_to_hbm [thread:$0]  (%p862_p9), %s803_s21, 128, %s801_s28, %s335_s29  }
  0xec PF: > { %s363_s18 = sand.u32 1, %s620_s12   ;;  %p863_p7 = scmp.ne.s32.totalorder %s858_s27, 0 }
  0xed   : > { %p864_p13 = scmp.ge.s32.totalorder %s640_s17, 2  ;;  %s364_s24 = scalar_lea.sflag [#allocation4], %s363_s18 }
  0xef   : > { %p461_p3 = pnand %p864_p13, %p863_p7 }
  0xf1   : > { %615 = dma.done.wait (!%p461_p3), %s364_s24, 128  }
  0xf2   : > { %617 = vsyncadd (!%p461_p3), %s364_s24, 4294967168  ;;  %s19_s17 = sadd.s32 1, %s640_s17   ;;  %s865_s12 = smov %s624_s13 }
  0xf3   : > { %p16_p6 = scmp.ge.s32.totalorder %s19_s17, 4   ;;  %s866_s13 = smov %s628_s14 }
  0xf4   : > { %s867_s14 = smov %s724_s26  ;;  %s868_s15 = smov %s636_s16 }
  0xf5   : > { %s869_s16 = smov %s871_s20  ;;  %18 = sbr.rel (!%p16_p6) target bundleno = 6 (0x6), region = 77 }
  0xfc   :  { %369 = vsyncpa [#allocation3], 1 }
  0xfd   :  { %371 = vsyncpa [#allocation3 + $0x1], 1 }
  0xfe   :  { %372 = vsyncpa [#allocation4], 1 }
  0xff   :  { %374 = vsyncpa [#allocation4 + $0x1], 1 }

</bundles_post_ra>
